<compile_context>
chip_gen: v5e
topology: v5e:2x2
jax: 0.10.0
libtpu: 0.0.40
codegen_flags: <defaults>
</compile_context>

<pallas_src>
import jax
import jax.numpy as jnp
from jax.experimental import pallas as pl
from jax.experimental.pallas import tpu as pltpu


def policy_net_kernel(x_ref, w1_ref, b1_ref, w2_ref, b2_ref, w3t_ref, b3t_ref, o_ref):
    # Layer 1: (tile_b, 128) @ (128, 64) -- bf16 operands, f32 MXU accumulate.
    h = jnp.dot(x_ref[...].astype(jnp.bfloat16),
                w1_ref[...].astype(jnp.bfloat16),
                preferred_element_type=jnp.float32)
    h = jnp.maximum(h + b1_ref[...], 0.0)                     # f32 bias + ReLU (VPU)

    # Layer 2: (tile_b, 64) @ (64, 32).
    h = jnp.dot(h.astype(jnp.bfloat16), w2_ref[...],
                preferred_element_type=jnp.float32)
    h = jnp.maximum(h + b2_ref[...], 0.0)

    # Head, computed transposed so the stored block is lane-dense (lane = batch):
    #   y_t[o, b] = sum_k w3t[o, k] * h[b, k]
    y_t = jax.lax.dot_general(
        w3t_ref[...], h.astype(jnp.bfloat16),
        dimension_numbers=(((1,), (1,)), ((), ())),
        preferred_element_type=jnp.float32)                   # (d_out, tile_b)
    y_t = y_t + b3t_ref[...]

    # sigmoid(y) = 1 / (1 + exp(-y)); exp + approx reciprocal both hit the EUP.
    o_ref[...] = pl.reciprocal(1.0 + jnp.exp(-y_t), approx=True).astype(o_ref.dtype)


def _round_up(n, m):
    return ((n + m - 1) // m) * m


def policy_network_forward(x, params, *, tile_b=4096, compute_dtype=jnp.bfloat16):
    """y = sigmoid(relu(relu(x@W1+b1)@W2+b2)@W3+b3) as a batch-tiled Pallas call."""
    w1, b1, w2, b2, w3, b3 = params
    B, d_in = x.shape
    h1, h2 = w1.shape[1], w2.shape[1]
    d_out = w3.shape[1]

    # Streaming dtype for the dominant HBM read (x) and the largest weight (w1).
    # The kernel casts MXU operands to bf16 regardless; compute_dtype only
    # controls HBM traffic.  Default bf16 on all generations.
    stream_dtype = jnp.float32 if compute_dtype is None else compute_dtype
    x_in = x.astype(stream_dtype)
    w1_in = w1.astype(stream_dtype)
    w2_in = w2.astype(jnp.bfloat16)
    w3t_in = w3.T.astype(jnp.bfloat16)            # (d_out, h2) for the transposed head
    b1_f = b1.astype(jnp.float32)
    b2_f = b2.astype(jnp.float32)
    b3t = b3.astype(jnp.float32).T                # (d_out, 1), broadcasts over lanes

    # Batch tiling: single full-array tile for small B; otherwise a multiple of
    # 128 so both the x block (sublane axis) and the transposed output block
    # (lane axis) stay aligned.  Padded rows are zero-filled and sliced off.
    if B <= tile_b:
        tile_b = _round_up(B, 8)
    else:
        tile_b = _round_up(tile_b, 128)
    b_pad = _round_up(B, tile_b)
    if b_pad != B:
        x_in = jnp.pad(x_in, ((0, b_pad - B), (0, 0)))
    num_tiles = b_pad // tile_b

    # Triple-buffer the x stream only when there are enough tiles to benefit.
    x_spec_kwargs = {}
    if num_tiles >= 4:
        x_spec_kwargs["pipeline_mode"] = pl.Buffered(3)
    x_spec = pl.BlockSpec((tile_b, d_in), lambda i: (i, 0), **x_spec_kwargs)

    bytes_in = x_in.size * x_in.dtype.itemsize
    bytes_w = sum(a.size * a.dtype.itemsize
                  for a in (w1_in, b1_f, w2_in, b2_f, w3t_in, b3t))
    bytes_out = b_pad * d_out * 4
    cost = pl.CostEstimate(
        flops=2 * b_pad * (d_in * h1 + h1 * h2 + h2 * d_out),
        transcendentals=b_pad * d_out,            # exp inside the sigmoid
        bytes_accessed=bytes_in + bytes_w + bytes_out,
    )

    out_t = pl.pallas_call(
        policy_net_kernel,
        out_shape=jax.ShapeDtypeStruct((d_out, b_pad), jnp.float32),
        grid=(num_tiles,),
        in_specs=[
            x_spec,                                           # streamed x tiles
            pl.BlockSpec(w1_in.shape, lambda i: (0, 0)),      # resident weights
            pl.BlockSpec(b1_f.shape, lambda i: (0, 0)),
            pl.BlockSpec(w2_in.shape, lambda i: (0, 0)),
            pl.BlockSpec(b2_f.shape, lambda i: (0, 0)),
            pl.BlockSpec(w3t_in.shape, lambda i: (0, 0)),
            pl.BlockSpec(b3t.shape, lambda i: (0, 0)),
        ],
        out_specs=pl.BlockSpec((d_out, tile_b), lambda i: (0, i)),  # lane-dense
        compiler_params=pltpu.CompilerParams(
            dimension_semantics=("parallel",),
        ),
        cost_estimate=cost,
    )(x_in, w1_in, b1_f, w2_in, b2_f, w3t_in, b3t)

    return out_t[:, :B].T                         # (B, d_out)


def init_params(key, input_dim=128, output_dim=2):
    """Mirror nn.Linear default init: uniform(-1/sqrt(fan_in), 1/sqrt(fan_in))."""
    dims = [(input_dim, 64), (64, 32), (32, output_dim)]
    params = []
    for fan_in, fan_out in dims:
        key, kw, kb = jax.random.split(key, 3)
        bound = 1.0 / float(jnp.sqrt(jnp.float32(fan_in)))
        params.append(jax.random.uniform(kw, (fan_in, fan_out), jnp.float32, -bound, bound))
        params.append(jax.random.uniform(kb, (1, fan_out), jnp.float32, -bound, bound))
    return tuple(params)


if __name__ == "__main__":
    key = jax.random.PRNGKey(0)
    k_x, k_x2, k_p = jax.random.split(key, 3)

    B, D_IN, D_OUT = 8, 128, 2
    params = init_params(k_p, D_IN, D_OUT)
    w1, b1, w2, b2, w3, b3 = params

    def ref_forward(xx):
        h = jnp.maximum(xx @ w1 + b1, 0.0)
        h = jnp.maximum(h @ w2 + b2, 0.0)
        return jax.nn.sigmoid(h @ w3 + b3)

    # Small single-tile case (matches the module's nominal usage).
    x = jax.random.normal(k_x, (B, D_IN), jnp.float32)
    out = jax.block_until_ready(policy_network_forward(x, params))
    assert out.shape == (B, D_OUT)
    assert jnp.allclose(out, ref_forward(x), atol=2e-2, rtol=2e-2)

    # Multi-tile case: exercises batch padding, streamed x tiles and the
    # lane-dense transposed writeback across grid steps.
    B2 = 300
    x2 = jax.random.normal(k_x2, (B2, D_IN), jnp.float32)
    out2 = jax.block_until_ready(policy_network_forward(x2, params, tile_b=128))
    assert out2.shape == (B2, D_OUT)
    assert jnp.allclose(out2, ref_forward(x2), atol=2e-2, rtol=2e-2)

    print("KERNEL_OK")
</pallas_src>

<mosaic_0001>
module attributes {stable_mosaic.version = 11 : i64} {
  func.func @policy_net_kernel(%arg0: i32, %arg1: memref<8x128xbf16, #tpu.memory_space<vmem>>, %arg2: memref<128x64xbf16, #tpu.memory_space<vmem>>, %arg3: memref<1x64xf32, #tpu.memory_space<vmem>>, %arg4: memref<64x32xbf16, #tpu.memory_space<vmem>>, %arg5: memref<1x32xf32, #tpu.memory_space<vmem>>, %arg6: memref<2x32xbf16, #tpu.memory_space<vmem>>, %arg7: memref<2x1xf32, #tpu.memory_space<vmem>>, %arg8: memref<2x8xf32, #tpu.memory_space<vmem>>) attributes {dimension_semantics = [#tpu.dimension_semantics<parallel>], iteration_bounds = array<i64: 1>, scalar_prefetch = 0 : i64, scratch_operands = 0 : i64, tpu.core_type = #tpu.core_type<tc>, window_params = [{transform_indices = @transform_0, window_bounds = array<i64: 8, 128>}, {pipeline_mode = #tpu.pipeline_mode<synchronous>, transform_indices = @transform_1, window_bounds = array<i64: 128, 64>}, {pipeline_mode = #tpu.pipeline_mode<synchronous>, transform_indices = @transform_2, window_bounds = array<i64: 1, 64>}, {pipeline_mode = #tpu.pipeline_mode<synchronous>, transform_indices = @transform_3, window_bounds = array<i64: 64, 32>}, {pipeline_mode = #tpu.pipeline_mode<synchronous>, transform_indices = @transform_4, window_bounds = array<i64: 1, 32>}, {pipeline_mode = #tpu.pipeline_mode<synchronous>, transform_indices = @transform_5, window_bounds = array<i64: 2, 32>}, {pipeline_mode = #tpu.pipeline_mode<synchronous>, transform_indices = @transform_6, window_bounds = array<i64: 2, 1>}, {transform_indices = @transform_7, window_bounds = array<i64: 2, 8>}]} {
    %c0 = arith.constant 0 : index
    %c0_0 = arith.constant 0 : index
    %0 = vector.load %arg1[%c0, %c0_0] : memref<8x128xbf16, #tpu.memory_space<vmem>>, vector<8x128xbf16>
    %c0_1 = arith.constant 0 : index
    %c0_2 = arith.constant 0 : index
    %1 = vector.load %arg2[%c0_1, %c0_2] : memref<128x64xbf16, #tpu.memory_space<vmem>>, vector<128x64xbf16>
    %cst = arith.constant dense<0.000000e+00> : vector<8x64xf32>
    %2 = tpu.matmul %0, %1, %cst {dimension_numbers = #tpu.dot_dimension_numbers<[1], [0], [0], [1], [0, 0, 1, 1], [], []>} : vector<8x128xbf16>, vector<128x64xbf16>, vector<8x64xf32> -> vector<8x64xf32>
    %c0_3 = arith.constant 0 : index
    %c0_4 = arith.constant 0 : index
    %3 = vector.load %arg3[%c0_3, %c0_4] : memref<1x64xf32, #tpu.memory_space<vmem>>, vector<1x64xf32>
    %4 = vector.broadcast %3 : vector<1x64xf32> to vector<8x64xf32>
    %5 = arith.addf %2, %4 : vector<8x64xf32>
    %cst_5 = arith.constant 0.000000e+00 : f32
    %6 = vector.broadcast %cst_5 : f32 to vector<8x64xf32>
    %7 = arith.maximumf %5, %6 : vector<8x64xf32>
    %8 = arith.truncf %7 : vector<8x64xf32> to vector<8x64xbf16>
    %c0_6 = arith.constant 0 : index
    %c0_7 = arith.constant 0 : index
    %9 = vector.load %arg4[%c0_6, %c0_7] : memref<64x32xbf16, #tpu.memory_space<vmem>>, vector<64x32xbf16>
    %cst_8 = arith.constant dense<0.000000e+00> : vector<8x32xf32>
    %10 = tpu.matmul %8, %9, %cst_8 {dimension_numbers = #tpu.dot_dimension_numbers<[1], [0], [0], [1], [0, 0, 1, 1], [], []>} : vector<8x64xbf16>, vector<64x32xbf16>, vector<8x32xf32> -> vector<8x32xf32>
    %c0_9 = arith.constant 0 : index
    %c0_10 = arith.constant 0 : index
    %11 = vector.load %arg5[%c0_9, %c0_10] : memref<1x32xf32, #tpu.memory_space<vmem>>, vector<1x32xf32>
    %12 = vector.broadcast %11 : vector<1x32xf32> to vector<8x32xf32>
    %13 = arith.addf %10, %12 : vector<8x32xf32>
    %cst_11 = arith.constant 0.000000e+00 : f32
    %14 = vector.broadcast %cst_11 : f32 to vector<8x32xf32>
    %15 = arith.maximumf %13, %14 : vector<8x32xf32>
    %c0_12 = arith.constant 0 : index
    %c0_13 = arith.constant 0 : index
    %16 = vector.load %arg6[%c0_12, %c0_13] : memref<2x32xbf16, #tpu.memory_space<vmem>>, vector<2x32xbf16>
    %17 = arith.truncf %15 : vector<8x32xf32> to vector<8x32xbf16>
    %cst_14 = arith.constant dense<0.000000e+00> : vector<2x8xf32>
    %18 = tpu.matmul %16, %17, %cst_14 {dimension_numbers = #tpu.dot_dimension_numbers<[1], [1], [0], [0], [0, 0, 1, 0], [], []>} : vector<2x32xbf16>, vector<8x32xbf16>, vector<2x8xf32> -> vector<2x8xf32>
    %c0_15 = arith.constant 0 : index
    %c0_16 = arith.constant 0 : index
    %19 = vector.load %arg7[%c0_15, %c0_16] : memref<2x1xf32, #tpu.memory_space<vmem>>, vector<2x1xf32>
    %20 = vector.broadcast %19 : vector<2x1xf32> to vector<2x8xf32>
    %21 = arith.addf %18, %20 : vector<2x8xf32>
    %cst_17 = arith.constant 0.000000e+00 : f32
    %22 = vector.broadcast %cst_17 : f32 to vector<2x8xf32>
    %23 = arith.subf %22, %21 : vector<2x8xf32>
    %24 = math.exp %23 : vector<2x8xf32>
    %cst_18 = arith.constant 1.000000e+00 : f32
    %25 = vector.broadcast %cst_18 : f32 to vector<2x8xf32>
    %26 = arith.addf %25, %24 : vector<2x8xf32>
    %27 = tpu.reciprocal %26 {approx = true} : vector<2x8xf32> -> vector<2x8xf32>
    %c0_19 = arith.constant 0 : index
    %c0_20 = arith.constant 0 : index
    %28 = vector.load %arg8[%c0_19, %c0_20] : memref<2x8xf32, #tpu.memory_space<vmem>>, vector<2x8xf32>
    tpu.vector_store %arg8[%c0_19, %c0_20], %27 {strides = array<i32>} : memref<2x8xf32, #tpu.memory_space<vmem>>, vector<2x8xf32>,
    return
  }
  func.func @transform_0(%arg0: i32) -> (i32, i32) {
    %c0_i32 = arith.constant 0 : i32
    %c0_i32_0 = arith.constant 0 : i32
    return %arg0, %c0_i32 : i32, i32
  }
  func.func @transform_1(%arg0: i32) -> (i32, i32) {
    %c0_i32 = arith.constant 0 : i32
    %c0_i32_0 = arith.constant 0 : i32
    %c0_i32_1 = arith.constant 0 : i32
    return %c0_i32, %c0_i32_0 : i32, i32
  }
  func.func @transform_2(%arg0: i32) -> (i32, i32) {
    %c0_i32 = arith.constant 0 : i32
    %c0_i32_0 = arith.constant 0 : i32
    %c0_i32_1 = arith.constant 0 : i32
    return %c0_i32, %c0_i32_0 : i32, i32
  }
  func.func @transform_3(%arg0: i32) -> (i32, i32) {
    %c0_i32 = arith.constant 0 : i32
    %c0_i32_0 = arith.constant 0 : i32
    %c0_i32_1 = arith.constant 0 : i32
    return %c0_i32, %c0_i32_0 : i32, i32
  }
  func.func @transform_4(%arg0: i32) -> (i32, i32) {
    %c0_i32 = arith.constant 0 : i32
    %c0_i32_0 = arith.constant 0 : i32
    %c0_i32_1 = arith.constant 0 : i32
    return %c0_i32, %c0_i32_0 : i32, i32
  }
  func.func @transform_5(%arg0: i32) -> (i32, i32) {
    %c0_i32 = arith.constant 0 : i32
    %c0_i32_0 = arith.constant 0 : i32
    %c0_i32_1 = arith.constant 0 : i32
    return %c0_i32, %c0_i32_0 : i32, i32
  }
  func.func @transform_6(%arg0: i32) -> (i32, i32) {
    %c0_i32 = arith.constant 0 : i32
    %c0_i32_0 = arith.constant 0 : i32
    %c0_i32_1 = arith.constant 0 : i32
    return %c0_i32, %c0_i32_0 : i32, i32
  }
  func.func @transform_7(%arg0: i32) -> (i32, i32) {
    %c0_i32 = arith.constant 0 : i32
    %c0_i32_0 = arith.constant 0 : i32
    return %c0_i32, %arg0 : i32, i32
  }
}

</mosaic_0001>

<bundles_post_ra>
// kernel: tpu_custom_call.1
= control target key start
LH: loop header
LB: loop body
LE: loop exit
PB: predicated region body
PF: predicated region fallthrough
CT: control target
= control target key end

     0   :  { %s410_s0 = inlined_call_operand.vmem [shape: bf16[8,128], index: 0, kind: input, shape index: {}]   ;;  %s411_s1 = inlined_call_operand.vmem [shape: bf16[128,64], index: 1, kind: input, shape index: {}]   ;;  %s412_s2 = inlined_call_operand.vmem [shape: f32[1,64], index: 2, kind: input, shape index: {}]   ;;  %s413_s3 = inlined_call_operand.vmem [shape: bf16[64,32], index: 3, kind: input, shape index: {}]   ;;  %s414_s4 = inlined_call_operand.vmem [shape: f32[1,32], index: 4, kind: input, shape index: {}]   ;;  %s415_s5 = inlined_call_operand.vmem [shape: bf16[2,32], index: 5, kind: input, shape index: {}]   ;;  %s416_s6 = inlined_call_operand.vmem [shape: f32[2,1], index: 6, kind: input, shape index: {}]   ;;  %s417_s7 = inlined_call_operand.hbm [shape: f32[2,8], index: 7, kind: output, shape index: {}]  }
   0x1   :  { %v274_v0 = vld [vmem:[%s411_s1 + $0x38] sm:$0xff]  ;;  %v273_v1 = vld [vmem:[%s411_s1 + $0x30] sm:$0xff] }
   0x2   :  { %97 = vmatpush.bf16.msra.mxu0 %v274_v0  ;;  %v278_v2 = vld [vmem:[%s413_s3 + $0x18] sm:$0xff] }
   0x3   :  { %12 = vsyncpa [#allocation3], 0  ;;  %156 = vmatpush.bf16.msra.mxu1 %v278_v2  ;;  %v277_v3 = vld [vmem:[%s413_s3 + $0x10] sm:$0xff]  ;;  %v272_v4 = vld [vmem:[%s411_s1 + $0x28] sm:$0xff]  ;;  %vm148_vm0 = vcmask 523264   ;;  %v314_v20 = vmov 0  }
   0x4   :  { %v271_v5 = vld [vmem:[%s411_s1 + $0x20] sm:$0xff]  ;;  %v270_v6 = vld [vmem:[%s411_s1 + $0x18] sm:$0xff]  ;;  %v269_v7 = vld [vmem:[%s411_s1 + $0x10] sm:$0xff]  ;;  %281 = vset.pattern.permute.xlu0 %v314_v20  ;;  %vm174_vm1 = vcmask 261120   ;;  %s208_s10 = sshll.u32 %s417_s7, 4  ;;  %vm199_vm2 = vcmask 58368   ;;  %s209_s10 = int_to_ptr.hbm [resolvable:$true] %s208_s10 }
   0x5   :  { %v268_v8 = vld [vmem:[%s411_s1 + $0x8] sm:$0xff]  ;;  %v267_v9 = vld [vmem:[%s411_s1] sm:$0xff] }
   0x6   :  { %98 = vmatpush.bf16.msra.mxu0 %v273_v1  ;;  %v28_v10 = vld [vmem:[%s410_s0] sm:$0xf]  ;;  %v276_v11 = vld [vmem:[%s413_s3 + $0x8] sm:$0xff] }
   0x7   :  { %157 = vmatpush.bf16.msra.mxu1 %v277_v3  ;;  %v275_v12 = vld [vmem:[%s413_s3] sm:$0xff] }
   0x8   :  { %v282_v13 = vld [vmem:[%s412_s2] ss:$0 sm:$0xff] }
   0x9   :  { %v168_v19 = vld [vmem:[%s416_s6] sm:$0x3] }
   0xa   :  { %99 = vmatpush.bf16.msra.mxu0 %v272_v4  ;;  %171 = vperm.xlu0 %281, %v168_v19   ;;  %v283_v21 = vld [vmem:[%s414_s4] ss:$0 sm:$0xff]  ;;  %s315_s4 = smov [#allocation2]  }
   0xb   :  { %158 = vmatpush.bf16.msra.mxu1 %v276_v11  ;;  %v166_v28 = vld [vmem:[%s415_s5] sm:$0x1]  ;;  %s206_s6 = sshll.u32 %s315_s4, 4  ;;  %s207_s6 = int_to_ptr.vmem [resolvable:$true] %s206_s6 }
   0xe   :  { %100 = vmatpush.bf16.msra.mxu0 %v271_v5 }
   0xf   :  { %159 = vmatpush.bf16.msra.mxu1 %v275_v12 }
  0x12   :  { %101 = vmatpush.bf16.msra.mxu0 %v270_v6 }
  0x16   :  { %102 = vmatpush.bf16.msra.mxu0 %v269_v7 }
  0x1a   :  { %103 = vmatpush.bf16.msra.mxu0 %v268_v8 }
  0x1e   :  { %104 = vmatpush.bf16.msra.mxu0 %v267_v9 }
  0x21   :  { %105 = vmatmul.bf16.vlgmr.msra.gmra.mxu0 %v28_v10 }
  0x7c   :  { %v172_v29 = vpop.permute.xlu0 %171 }
  0x9e   :  { %v106_v14 = vpop.f32.mrf.mxu0 }
  0x9f   :  { %v107_v15 = vadd.f32 %v282_v13, %v106_v14 }
  0xa1   :  { %v110_v16 = vmax.f32 %v107_v15, 0.0 }
  0xa3   :  { %v111_v17 = vpack.c.bf16 %v110_v16, %v110_v16 }
  0xa5   :  { %265 = vmatmul.msk.bf16.vlgmr.msra.gmra.mxu1 %vm148_vm0, %v111_v17 }
  0xa6   :  { %v108_v18 = vpop.f32.mrf.mxu0 }
 0x122   :  { %v161_v22 = vpop.f32.mrf.mxu1 }
 0x123   :  { %v162_v23 = vadd.f32 %v283_v21, %v161_v22 }
 0x125   :  { %v165_v24 = vmax.f32 %v162_v23, 0.0 }
 0x127   :  { %v167_v25 = vpack.c.bf16 %v165_v24, %v165_v24 }
 0x129   :  { %v179_v26 = vsel %vm174_vm1, %v167_v25, 0 }
 0x12a   :  { %v163_v27 = vpop.f32.mrf.mxu1  ;;  %188 = vmatpush.bf16.xpose.msra.mxu2 %v179_v26 }
 0x131   :  { %266 = vmatmul.msk.bf16.vlgmr.msra.gmra.mxu2 %vm174_vm1, %v166_v28 }
 0x1b4   :  { %v190_v30 = vpop.f32.mrf.mxu2 }
 0x1b5   :  { %v191_v31 = vadd.f32 %v190_v30, %v172_v29 }
 0x1b7   :  { %v194_v32 = vsub.f32 0.0, %v191_v31 }
 0x1b9   :  { %v195_v33 = vmul.f32 1.442695, %v194_v32 }
 0x1bb   :  { %284 = vpow2.f32 %v195_v33 }
 0x1bc   :  { %v192_v34 = vpop.f32.mrf.mxu2 }
 0x1c1   :  { %v285_v35 = vpop.eup %284 }
 0x1c2   :  { %v197_v36 = vadd.f32 1.0, %v285_v35 }
 0x1c4   :  { %286 = vrcp.f32 %v197_v36 }
 0x1ca   :  { %v287_v37 = vpop.eup %286 }
 0x1cb   :  { %200 = vst.msk [vmem:[#allocation2] sm:$0x3] %vm199_vm2, %v287_v37 }
 0x1cc   :  { %211 = dma.vmem_to_hbm [thread:$0]  %s207_s6, 32, %s209_s10, [#allocation3]  }
 0x1cd   :  { %312 = dma.done.wait [#allocation3], 32  }
 0x1ce   :  { %313 = vsyncadd [#allocation3], 4294967264 }
 0x1cf   :  { %216 = vsyncpa [#allocation3], 1 }

</bundles_post_ra>
